<compile_context>
chip_gen: v7x
topology: tpu7x:2x2x1
jax: 0.10.0
libtpu: 0.0.40
codegen_flags: <defaults>
</compile_context>

<pallas_src>
import jax
import jax.numpy as jnp
from jax import lax
from jax.experimental import pallas as pl
from jax.experimental.pallas import tpu as pltpu


def _make_cfm_kernel(total_b, block_b, tnj, mask_batch_tail):
    def kernel(z1_ref, z2_ref, out_ref):
        j = pl.program_id(1)

        z1 = z1_ref[...]                       # (Bt, N, D)   input dtype
        z2 = z2_ref[...]                       # (Bt, TNj, D) input dtype

        # gram2[b, i, l] = 2 * <z1[b, i], z2[b, j0 + l]>  (MXU, f32 accumulate).
        # The exact power-of-two scale rides on the smaller operand.
        gram2 = jnp.einsum('bnd,bmd->bnm', z1, z2 * 2,
                           preferred_element_type=jnp.float32)   # (Bt, N, TNj)

        z1f = z1.astype(jnp.float32)
        z2f = z2.astype(jnp.float32)
        sq1 = jnp.sum(z1f * z1f, axis=-1)      # (Bt, N)
        sq2 = jnp.sum(z2f * z2f, axis=-1)      # (Bt, TNj)

        # logits[b, i, l] = -||z2_{j0+l} - z1_i||^2 = 2<z1_i,z2_j> - |z1_i|^2 - |z2_j|^2
        logits = gram2 - sq1[:, :, None] - sq2[:, None, :]       # (Bt, N, TNj)

        # Target logit for global column j0+l is logits[b, j0+l, j0+l]; compute
        # it directly from the difference vectors (exact, no cancellation).
        j0 = pl.multiple_of(j * tnj, tnj)
        z1d = z1_ref[:, pl.ds(j0, tnj), :].astype(jnp.float32)   # (Bt, TNj, D)
        diff = z2f - z1d
        diag = -jnp.sum(diff * diff, axis=-1)                    # (Bt, TNj)

        # Cross entropy over the class (i / row) axis.
        # TODO(synk): for N in the many-thousands, also tile N_i with an
        # online-softmax (running max / sum-of-exp kept in VMEM scratch).
        m = jnp.max(logits, axis=1)                              # (Bt, TNj)
        lse = m + jnp.log(jnp.sum(jnp.exp(logits - m[:, None, :]), axis=1))

        per_col = lse - diag                                     # (Bt, TNj)

        if mask_batch_tail:
            # Grid tail: batch rows >= total_b hold unspecified padding -> drop.
            row = (pl.program_id(0) * block_b
                   + lax.broadcasted_iota(jnp.int32, per_col.shape, 0))
            per_col = jnp.where(row < total_b, per_col, 0.0)

        partial = jnp.sum(per_col)                               # scalar f32
        # Lane-dense (8, 128) write of the per-step partial sum (unmasked vst).
        out_ref[...] = jnp.full(out_ref.shape, partial, dtype=out_ref.dtype)

    return kernel


def _device_kind():
    try:
        return jax.devices()[0].device_kind.lower()
    except Exception:
        return ""


def _cdiv(a, b):
    return -(-a // b)


def _pick_col_chunk(n):
    """N_j chunk width: bounds the live f32 (N x TNj) temporaries."""
    if n <= 512:
        return n
    for c in range(512, 127, -128):        # prefer MXU-friendly multiples of 128
        if n % c == 0:
            return c
    for c in range(512, 7, -8):            # any sublane-aligned divisor
        if n % c == 0:
            return c
    # TODO(synk): masked ragged N_j tail when N has no aligned divisor <= 512.
    return n


def cfm_loss(z1, z2, *, block_b=None):
    """z1, z2: (B, N, D) arrays. Returns scalar float32 loss."""
    assert z1.shape == z2.shape and z1.ndim == 3
    B, N, D = z1.shape
    itemsize = jnp.dtype(z1.dtype).itemsize

    kind = _device_kind()
    small_vmem = ("v7" in kind) or ("7x" in kind) or (not kind)  # v7x: 64 MiB/TC
    budget = (24 << 20) if small_vmem else (48 << 20)            # v5e/v6e: 128 MiB
    vmem_limit = (52 << 20) if small_vmem else (100 << 20)

    tnj = _pick_col_chunk(N)
    nc = N // tnj if N % tnj == 0 else 1
    if N % tnj != 0:
        tnj = N  # fall back to un-chunked columns

    # Honest per-batch-element VMEM footprint (bytes): double-buffered z1 block
    # and z2 chunk, f32 casts of both, ~3 concurrently-live f32 (N x TNj)
    # temporaries (gram / logits / exp), plus small per-column vectors.
    per_b = (2 * N * D * itemsize + 2 * tnj * D * itemsize
             + 4 * (N + tnj) * D + 12 * N * tnj
             + 4 * (2 * N + 6 * tnj))
    if block_b is None:
        block_b = int(max(1, min(B, budget // per_b)))

    nb = _cdiv(B, block_b)
    # v7x megacore: keep >= 2 parallel grid steps so both TensorCores get work.
    if (("v7" in kind) or ("7x" in kind)) and nb * nc < 2 and B > 1:
        block_b = _cdiv(B, 2)
        nb = _cdiv(B, block_b)

    kernel = _make_cfm_kernel(B, block_b, tnj,
                              mask_batch_tail=(B % block_b != 0))

    partials = pl.pallas_call(
        kernel,
        out_shape=jax.ShapeDtypeStruct((nb, nc, 8, 128), jnp.float32),
        grid_spec=pltpu.PrefetchScalarGridSpec(
            num_scalar_prefetch=0,
            grid=(nb, nc),   # column axis innermost -> z1 block stays resident
            in_specs=[
                pl.BlockSpec((block_b, N, D), lambda b, j: (b, 0, 0)),
                pl.BlockSpec((block_b, tnj, D), lambda b, j: (b, j, 0)),
            ],
            out_specs=pl.BlockSpec((1, 1, 8, 128), lambda b, j: (b, j, 0, 0)),
        ),
        compiler_params=pltpu.CompilerParams(
            # Every (batch block, column chunk) step is independent.
            dimension_semantics=("parallel", "parallel"),
            vmem_limit_bytes=int(vmem_limit)),
    )(z1, z2)

    return jnp.sum(partials[:, :, 0, 0]) / jnp.float32(B * N)


def cfm_loss_ref(z1, z2):
    """Pure-JAX reference matching the PyTorch module exactly (3-D inputs)."""
    z1 = z1.astype(jnp.float32)
    z2 = z2.astype(jnp.float32)
    dz = z2[..., None, :, :] - z1[..., :, None, :]          # (B, N_i, N_j, D)
    logits = -jnp.einsum('...d,...d->...', dz, dz)          # (B, N_i, N_j)
    lse = jax.scipy.special.logsumexp(logits, axis=1)       # class dim = 1 (i)
    diag = jnp.diagonal(logits, axis1=1, axis2=2)           # logits[b, j, j]
    return jnp.mean(lse - diag)


if __name__ == "__main__":
    key = jax.random.PRNGKey(0)

    # Main small test (shapes consistent with the module: batch=2, seq=8, hidden=32).
    B, N, D = 2, 8, 32
    k1, k2, k3, k4 = jax.random.split(key, 4)
    z1 = jax.random.normal(k1, (B, N, D), dtype=jnp.float32)
    z2 = jax.random.normal(k2, (B, N, D), dtype=jnp.float32)

    loss = jax.block_until_ready(cfm_loss(z1, z2))
    ref = jax.block_until_ready(cfm_loss_ref(z1, z2))
    assert jnp.allclose(loss, ref, rtol=1e-4, atol=1e-4), (loss, ref)

    # Extra check: awkward batch size exercising the masked tail block.
    B2, N2, D2 = 5, 16, 32
    w1 = jax.random.normal(k3, (B2, N2, D2), dtype=jnp.float32)
    w2 = jax.random.normal(k4, (B2, N2, D2), dtype=jnp.float32)
    loss2 = jax.block_until_ready(cfm_loss(w1, w2, block_b=2))
    ref2 = jax.block_until_ready(cfm_loss_ref(w1, w2))
    assert jnp.allclose(loss2, ref2, rtol=1e-4, atol=1e-4), (loss2, ref2)

    print("KERNEL_OK")
</pallas_src>

<mosaic_0001>
module attributes {stable_mosaic.version = 11 : i64} {
  func.func @kernel(%arg0: i32, %arg1: i32, %arg2: memref<2x8x32xf32, #tpu.memory_space<vmem>>, %arg3: memref<2x8x32xf32, #tpu.memory_space<vmem>>, %arg4: memref<1x1x8x128xf32, #tpu.memory_space<vmem>>) attributes {dimension_semantics = [#tpu.dimension_semantics<parallel>, #tpu.dimension_semantics<parallel>], iteration_bounds = array<i64: 1, 1>, scalar_prefetch = 0 : i64, scratch_operands = 0 : i64, tpu.core_type = #tpu.core_type<tc>, window_params = [{transform_indices = @transform_0, window_bounds = array<i64: 2, 8, 32>}, {transform_indices = @transform_1, window_bounds = array<i64: 2, 8, 32>}, {transform_indices = @transform_2, window_bounds = array<i64: 1, 1, 8, 128>}]} {
    %c0 = arith.constant 0 : index
    %c0_0 = arith.constant 0 : index
    %c0_1 = arith.constant 0 : index
    %0 = vector.load %arg2[%c0, %c0_0, %c0_1] : memref<2x8x32xf32, #tpu.memory_space<vmem>>, vector<2x8x32xf32>
    %c0_2 = arith.constant 0 : index
    %c0_3 = arith.constant 0 : index
    %c0_4 = arith.constant 0 : index
    %1 = vector.load %arg3[%c0_2, %c0_3, %c0_4] : memref<2x8x32xf32, #tpu.memory_space<vmem>>, vector<2x8x32xf32>
    %cst = arith.constant 2.000000e+00 : f32
    %2 = vector.broadcast %cst : f32 to vector<2x8x32xf32>
    %3 = arith.mulf %1, %2 : vector<2x8x32xf32>
    "tpu.trace_start"() <{level = 10 : i32, message = "bnd,bmd->bnm"}> : () -> ()
    %cst_5 = arith.constant dense<0.000000e+00> : vector<2x8x8xf32>
    %4 = tpu.matmul %0, %3, %cst_5 {dimension_numbers = #tpu.dot_dimension_numbers<[2], [2], [1], [1], [0, 0, 0, 1, 1, 1], [0], [0]>} : vector<2x8x32xf32>, vector<2x8x32xf32>, vector<2x8x8xf32> -> vector<2x8x8xf32>
    "tpu.trace_stop"() : () -> ()
    %5 = arith.mulf %0, %0 : vector<2x8x32xf32>
    %cst_6 = arith.constant dense<0.000000e+00> : vector<2x8xf32>
    %6 = vector.multi_reduction <add>, %5, %cst_6 [2] : vector<2x8x32xf32> to vector<2x8xf32>
    %7 = arith.mulf %1, %1 : vector<2x8x32xf32>
    %cst_7 = arith.constant dense<0.000000e+00> : vector<2x8xf32>
    %8 = vector.multi_reduction <add>, %7, %cst_7 [2] : vector<2x8x32xf32> to vector<2x8xf32>
    %9 = vector.shape_cast %6 : vector<2x8xf32> to vector<2x8x1xf32>
    %10 = vector.broadcast %9 : vector<2x8x1xf32> to vector<2x8x8xf32>
    %11 = arith.subf %4, %10 : vector<2x8x8xf32>
    %12 = vector.shape_cast %8 : vector<2x8xf32> to vector<2x1x8xf32>
    %13 = vector.broadcast %12 : vector<2x1x8xf32> to vector<2x8x8xf32>
    %14 = arith.subf %11, %13 : vector<2x8x8xf32>
    %c8_i32 = arith.constant 8 : i32
    %15 = arith.muli %arg1, %c8_i32 : i32
    %16 = tpu.assume_multiple %15, 8 : i32
    %c0_8 = arith.constant 0 : index
    %17 = arith.index_cast %16 : i32 to index
    %c0_9 = arith.constant 0 : index
    %18 = vector.load %arg2[%c0_8, %17, %c0_9] : memref<2x8x32xf32, #tpu.memory_space<vmem>>, vector<2x8x32xf32>
    %19 = arith.subf %1, %18 : vector<2x8x32xf32>
    %20 = arith.mulf %19, %19 : vector<2x8x32xf32>
    %cst_10 = arith.constant dense<0.000000e+00> : vector<2x8xf32>
    %21 = vector.multi_reduction <add>, %20, %cst_10 [2] : vector<2x8x32xf32> to vector<2x8xf32>
    %cst_11 = arith.constant 0.000000e+00 : f32
    %22 = vector.broadcast %cst_11 : f32 to vector<2x8xf32>
    %23 = arith.subf %22, %21 : vector<2x8xf32>
    %cst_12 = arith.constant dense<0xFF800000> : vector<2x8xf32>
    %24 = vector.multi_reduction <maximumf>, %14, %cst_12 [1] : vector<2x8x8xf32> to vector<2x8xf32>
    %25 = vector.shape_cast %24 : vector<2x8xf32> to vector<2x1x8xf32>
    %26 = vector.broadcast %25 : vector<2x1x8xf32> to vector<2x8x8xf32>
    %27 = arith.subf %14, %26 : vector<2x8x8xf32>
    %28 = math.exp %27 : vector<2x8x8xf32>
    %cst_13 = arith.constant dense<0.000000e+00> : vector<2x8xf32>
    %29 = vector.multi_reduction <add>, %28, %cst_13 [1] : vector<2x8x8xf32> to vector<2x8xf32>
    %30 = math.log %29 : vector<2x8xf32>
    %31 = arith.addf %24, %30 : vector<2x8xf32>
    %32 = arith.subf %31, %23 : vector<2x8xf32>
    %33 = vector.shape_cast %32 : vector<2x8xf32> to vector<1x2x8xf32>
    %cst_14 = arith.constant dense<0.000000e+00> : vector<1xf32>
    %34 = vector.multi_reduction <add>, %33, %cst_14 [1, 2] : vector<1x2x8xf32> to vector<1xf32>
    %35 = vector.shape_cast %34 : vector<1xf32> to vector<1x1x1xf32>
    %36 = vector.extract %35[0, 0, 0] : f32 from vector<1x1x1xf32>
    %37 = vector.broadcast %36 : f32 to vector<1x1x8x128xf32>
    %c0_15 = arith.constant 0 : index
    %c0_16 = arith.constant 0 : index
    %c0_17 = arith.constant 0 : index
    %c0_18 = arith.constant 0 : index
    %38 = vector.load %arg4[%c0_15, %c0_16, %c0_17, %c0_18] : memref<1x1x8x128xf32, #tpu.memory_space<vmem>>, vector<1x1x8x128xf32>
    tpu.vector_store %arg4[%c0_15, %c0_16, %c0_17, %c0_18], %37 {strides = array<i32>} : memref<1x1x8x128xf32, #tpu.memory_space<vmem>>, vector<1x1x8x128xf32>,
    return
  }
  func.func @transform_0(%arg0: i32, %arg1: i32) -> (i32, i32, i32) {
    %c0_i32 = arith.constant 0 : i32
    %c0_i32_0 = arith.constant 0 : i32
    %c0_i32_1 = arith.constant 0 : i32
    return %arg0, %c0_i32, %c0_i32_0 : i32, i32, i32
  }
  func.func @transform_1(%arg0: i32, %arg1: i32) -> (i32, i32, i32) {
    %c0_i32 = arith.constant 0 : i32
    %c0_i32_0 = arith.constant 0 : i32
    return %arg0, %arg1, %c0_i32 : i32, i32, i32
  }
  func.func @transform_2(%arg0: i32, %arg1: i32) -> (i32, i32, i32, i32) {
    %c0_i32 = arith.constant 0 : i32
    %c0_i32_0 = arith.constant 0 : i32
    %c0_i32_1 = arith.constant 0 : i32
    return %arg0, %arg1, %c0_i32, %c0_i32_0 : i32, i32, i32, i32
  }
}

</mosaic_0001>

<bundles_post_ra>
// kernel: tpu_custom_call.1
= control target key start
LH: loop header
LB: loop body
LE: loop exit
PB: predicated region body
PF: predicated region fallthrough
CT: control target
= control target key end

     0   :  { %7 = vsyncpa [#allocation3], 0  ;;  %s536_s0 = inlined_call_operand.hbm [shape: f32[2,8,32], index: 0, kind: input, shape index: {}]   ;;  %s537_s1 = inlined_call_operand.hbm [shape: f32[2,8,32], index: 1, kind: input, shape index: {}]   ;;  %s538_s2 = inlined_call_operand.hbm [shape: f32[1,1,8,128], index: 2, kind: output, shape index: {}]  }
   0x1   :  { %8 = vsyncpa [#allocation6], 0 }
   0x2   :  { %9 = vsyncpa [#allocation4], 0  ;;  %s464_s9 = smov [#allocation2]   ;;  %s392_s13 = scalar_lea.hbm %s536_s0, 256 }
   0x3   :  { %s15_s10 = sshll.u32 %s464_s9, 4  ;;  %p393_p0 = scmp.ne.s32.totalorder %s536_s0, %s392_s13  ;;  %s16_s10 = int_to_ptr.vmem [resolvable:$true] %s15_s10 }
   0x4   :  { %p396_p1 = scmp.lt.u32.totalorder %s392_s13, %s536_s0 }
   0x6   :  { %p398_p2 = pnand %p396_p1, %p393_p0 }
   0x8   :  { %401 = shalt.err (!%p398_p2)
}
   0x9   :  { %s402_s18 = scalar_lea.vmem %s16_s10, 256  ;;  %p407_p4 = scmp.lt.s32.totalorder %s16_s10, %s16_s10 }
   0xa   :  { %p403_p3 = scmp.ne.s32.totalorder %s16_s10, %s402_s18  ;;  %p408_p5 = scmp.lt.s32.totalorder %s402_s18, %s402_s18 }
   0xc   :  { %p409_p6 = por %p408_p5, %p407_p4 }
   0xe   :  { %p410_p7 = pnand %p409_p6, %p403_p3 }
  0x10   :  { %413 = shalt.err (!%p410_p7)
}
  0x11   :  { %s465_s19 = smov 128   ;;  %s466_s20 = smov 8  }
  0x12   :  { %21 = dma.hbm_to_vmem [thread:$0]  %s536_s0, 256, %s16_s10, [#allocation3], %s465_s19, %s465_s19, %s466_s20  }
  0x13   :  { %s467_s23 = smov [#allocation5]   ;;  %s414_s27 = scalar_lea.hbm %s537_s1, 256 }
  0x14   :  { %s27_s24 = sshll.u32 %s467_s23, 4  ;;  %p415_p8 = scmp.ne.s32.totalorder %s537_s1, %s414_s27  ;;  %s28_s24 = int_to_ptr.vmem [resolvable:$true] %s27_s24 }
  0x15   :  { %p418_p9 = scmp.lt.u32.totalorder %s414_s27, %s537_s1 }
  0x17   :  { %p420_p10 = pnand %p418_p9, %p415_p8 }
  0x19   :  { %423 = shalt.err (!%p420_p10)
}
  0x1a   :  { %s424_s4 = scalar_lea.vmem %s28_s24, 256  ;;  %p429_p12 = scmp.lt.s32.totalorder %s28_s24, %s28_s24 }
  0x1b   :  { %p425_p11 = scmp.ne.s32.totalorder %s28_s24, %s424_s4  ;;  %p430_p13 = scmp.lt.s32.totalorder %s424_s4, %s424_s4 }
  0x1d   :  { %p431_p0 = por %p430_p13, %p429_p12 }
  0x1f   :  { %p432_p1 = pnand %p431_p0, %p425_p11 }
  0x21   :  { %435 = shalt.err (!%p432_p1)
}
  0x22   :  { %33 = dma.hbm_to_vmem [thread:$0]  %s537_s1, 256, %s28_s24, [#allocation6], %s465_s19, %s465_s19, %s466_s20  }
  0x23   :  { %458 = dma.done.wait [#allocation3], 256  }
  0x24   :  { %459 = vsyncadd [#allocation3], 4294967040 }
  0x25   :  { %460 = dma.done.wait [#allocation6], 256  }
  0x26   :  { %461 = vsyncadd [#allocation6], 4294967040  ;;  %v468_v0 = vmov 0.0   ;;  %vm469_vm0 = vmmov 0   ;;  %v42_v1 = vld [vmem:[#allocation5] sm:$0xff]  ;;  %vm46_vm1 = vcmask 261120   ;;  %v219_v21 = vlaneseq }
  0x27   :  { %365 = vmatprep.subr.mxu0 %v468_v0  ;;  %370 = vmatprep.subr.mxu1 %v468_v0  ;;  %v43_v2 = vld [vmem:[#allocation5 + $0x8] sm:$0xff]  ;;  %v40_v3 = vld [vmem:[#allocation2] sm:$0xff]  ;;  %v44_v4 = vmul.f32 2.0, %v42_v1  ;;  %v41_v6 = vld [vmem:[#allocation2 + $0x8] sm:$0xff]  ;;  %v207_v10 = vmul.f32 %v42_v1, %v42_v1  ;;  %vm268_vm2 = vcmask 64512   ;;  %vm229_vm3 = vcmask 1041409  }
  0x28   :  { %367 = vmatprep.mubr.msk.f32.mxu0 %vm469_vm0, %v468_v0  ;;  %372 = vmatprep.mubr.msk.f32.mxu1 %vm469_vm0, %v468_v0  ;;  %v45_v5 = vmul.f32 2.0, %v43_v2  ;;  %v199_v7 = vmul.f32 %v40_v3, %v40_v3  ;;  %v208_v8 = vmul.f32 %v43_v2, %v43_v2  ;;  %v200_v9 = vmul.f32 %v41_v6, %v41_v6  ;;  %s470_s1 = smov [#allocation7]  }
  0x29   :  { %v257_v11 = vsub.f32 %v43_v2, %v41_v6  ;;  %v256_v12 = vsub.f32 %v42_v1, %v40_v3  ;;  %366 = vmatpush3.xpose.msk.msra.mxu0 %vm46_vm1, %v44_v4  ;;  %v209_v15 = vsel %vm46_vm1, %v207_v10, 0.0  ;;  %v220_v24 = vand.u32 127, %v219_v21  ;;  %s347_s6 = sshll.u32 %s470_s1, 4  ;;  %s348_s6 = int_to_ptr.vmem [resolvable:$true] %s347_s6 }
  0x2a   :  { %371 = vmatpush3.xpose.msk.msra.mxu1 %vm46_vm1, %v45_v5  ;;  %v201_v13 = vsel %vm46_vm1, %v199_v7, 0.0  ;;  %v204_v14 = vsel %vm46_vm1, %v200_v9, 0.0  ;;  %v212_v17 = vsel %vm46_vm1, %v208_v8, 0.0  ;;  %v222_v25 = vshrl.u32 %v219_v21, 7  ;;  %s436_s8 = scalar_lea.vmem %s348_s6, 128  ;;  %p441_p3 = scmp.lt.s32.totalorder %s348_s6, %s348_s6 }
  0x2b   :  { %202 = vadd.xlane.f32.xlu1 %v201_v13  ;;  %205 = vadd.xlane.f32.xlu0 %v204_v14  ;;  %v258_v16 = vmul.f32 %v256_v12, %v256_v12  ;;  %v259_v18 = vmul.f32 %v257_v11, %v257_v11  ;;  %vm328_vm4 = vcmask 58368   ;;  %p437_p2 = scmp.ne.s32.totalorder %s348_s6, %s436_s8  ;;  %p442_p4 = scmp.lt.s32.totalorder %s436_s8, %s436_s8 }
  0x2c   :  { %368 = vmatmul.mubr.msk.f32.vlgmr.msra.gmra.mrb[0].mxu0 %vm46_vm1, %v40_v3  ;;  %v223_v26 = vsub.s32 %v220_v24, %v222_v25 }
  0x2d   :  { %373 = vmatmul.mubr.msk.f32.vlgmr.msra.gmra.mrb[0].mxu1 %vm46_vm1, %v41_v6  ;;  %v260_v19 = vsel %vm46_vm1, %v258_v16, 0.0  ;;  %v263_v20 = vsel %vm46_vm1, %v259_v18, 0.0  ;;  %p443_p5 = por %p442_p4, %p441_p3 }
  0x2f   :  { %210 = vadd.xlane.f32.xlu1 %v209_v15  ;;  %213 = vadd.xlane.f32.xlu0 %v212_v17  ;;  %p444_p6 = pnand %p443_p5, %p437_p2 }
  0x33   :  { %261 = vadd.xlane.f32.xlu1 %v260_v19  ;;  %264 = vadd.xlane.f32.xlu0 %v263_v20 }
  0xb8   :  { %v206_v22 = vpop.xlane.xlu0 %205  ;;  %v203_v23 = vpop.xlane.xlu1 %202 }
  0xbc   :  { %v214_v27 = vpop.xlane.xlu0 %213  ;;  %v211_v28 = vpop.xlane.xlu1 %210 }
  0xbd   :  { %v228_v29 = vrot.slane %v214_v27, %v223_v26  ;;  %v224_v30 = vrot.slane %v211_v28, %v223_v26 }
  0xc0   :  { %v265_v9 = vpop.xlane.xlu0 %264  ;;  %v262_v10 = vpop.xlane.xlu1 %261 }
  0xc1   :  { %v267_v11 = vsub.f32 0.0, %v265_v9  ;;  %v266_v12 = vsub.f32 0.0, %v262_v10 }
  0xc3   :  { %v318_v16 = vrot.slane %v267_v11, %v223_v26  ;;  %v314_v19 = vrot.slane %v266_v12, %v223_v26 }
  0xff   :  { %v119_v32 = vpop.f32.mrb[0].mxu0 }
 0x100   :  { %v195_v31 = vpop.f32.mrb[0].mxu1  ;;  %v215_v34 = vsub.f32 %v119_v32, %v203_v23  ;;  %v369_v36 = vpop.f32.mrb[1].mxu0 }
 0x101   :  { %v216_v33 = vsub.f32 %v195_v31, %v206_v22  ;;  %v374_v35 = vpop.f32.mrb[1].mxu1 }
 0x102   :  { %v250_v38 = vsub.f32 %v215_v34, %v224_v30 }
 0x103   :  { %v251_v37 = vsub.f32 %v216_v33, %v228_v29 }
 0x104   :  { %v269_v40 = vsel %vm268_vm2, %v250_v38, -inf }
 0x105   :  { %v276_v39 = vsel %vm268_vm2, %v251_v37, -inf  ;;  %v270_v42 = vrot.slane %v269_v40, 4 }
 0x106   :  { %v277_v41 = vrot.slane %v276_v39, 4 }
 0x107   :  { %v271_v44 = vmax.f32 %v269_v40, %v270_v42 }
 0x108   :  { %v278_v43 = vmax.f32 %v276_v39, %v277_v41 }
 0x109   :  { %v272_v46 = vrot.slane %v271_v44, 2 }
 0x10a   :  { %v279_v45 = vrot.slane %v278_v43, 2 }
 0x10b   :  { %v273_v48 = vmax.f32 %v271_v44, %v272_v46 }
 0x10c   :  { %v280_v47 = vmax.f32 %v278_v43, %v279_v45 }
 0x10d   :  { %v274_v50 = vrot.slane %v273_v48, 1 }
 0x10e   :  { %v281_v49 = vrot.slane %v280_v47, 1 }
 0x10f   :  { %v275_v52 = vmax.f32 %v273_v48, %v274_v50 }
 0x110   :  { %v282_v51 = vmax.f32 %v280_v47, %v281_v49 }
 0x111   :  { %v283_v54 = vsub.f32 %v250_v38, %v275_v52 }
 0x112   :  { %v284_v53 = vsub.f32 %v251_v37, %v282_v51 }
 0x113   :  { %v285_v56 = vmul.f32 1.442695, %v283_v54 }
 0x114   :  { %v287_v55 = vmul.f32 1.442695, %v284_v53 }
 0x116   :  { %384 = vpow2.f32 %v287_v55 }
 0x117   :  { %386 = vpow2.f32 %v285_v56 }
 0x120   :  { %v385_v57 = vpop.eup %384 }
 0x121   :  { %v387_v58 = vpop.eup %386  ;;  %v296_v59 = vsel %vm268_vm2, %v385_v57, 0.0 }
 0x122   :  { %v297_v60 = vrot.slane %v296_v59, 4  ;;  %v289_v61 = vsel %vm268_vm2, %v387_v58, 0.0 }
 0x123   :  { %v290_v62 = vrot.slane %v289_v61, 4 }
 0x124   :  { %v298_v63 = vadd.f32 %v297_v60, %v296_v59 }
 0x125   :  { %v291_v0 = vadd.f32 %v290_v62, %v289_v61 }
 0x126   :  { %v299_v1 = vrot.slane %v298_v63, 2 }
 0x127   :  { %v292_v2 = vrot.slane %v291_v0, 2 }
 0x128   :  { %v300_v3 = vadd.f32 %v299_v1, %v298_v63 }
 0x129   :  { %v293_v4 = vadd.f32 %v292_v2, %v291_v0 }
 0x12a   :  { %v301_v5 = vrot.slane %v300_v3, 1 }
 0x12b   :  { %v294_v6 = vrot.slane %v293_v4, 1 }
 0x12c   :  { %v302_v7 = vadd.f32 %v301_v5, %v300_v3 }
 0x12d   :  { %v295_v8 = vadd.f32 %v294_v6, %v293_v4 }
 0x12e   :  { %388 = vlog2.f32 %v302_v7 }
 0x12f   :  { %390 = vlog2.f32 %v295_v8 }
 0x138   :  { %v389_v13 = vpop.eup %388 }
 0x139   :  { %v391_v14 = vpop.eup %390  ;;  %v306_v15 = vmul.f32 0.6931472, %v389_v13 }
 0x13a   :  { %v304_v17 = vmul.f32 0.6931472, %v391_v14 }
 0x13b   :  { %v308_v18 = vadd.f32 %v306_v15, %v282_v51 }
 0x13c   :  { %v307_v20 = vadd.f32 %v304_v17, %v275_v52 }
 0x13d   :  { %v322_v21 = vsub.f32 %v308_v18, %v318_v16 }
 0x13e   :  { %v321_v23 = vsub.f32 %v307_v20, %v314_v19 }
 0x13f   :  { %v325_v22 = vrot.slane %v322_v21, 7 }
 0x141   :  { %v326_v24 = vsel %vm229_vm3, %v325_v22, %v321_v23 }
 0x142   :  { %v329_v25 = vsel %vm328_vm4, %v326_v24, 0.0 }
 0x143   :  { %330 = vadd.xlane.f32.xlu0 %v329_v25 }
 0x1d0   :  { %v331_v27 = vpop.xlane.xlu0 %330 }
 0x1d1   :  { %v332_v28 = vrot.slane %v331_v27, 4 }
 0x1d3   :  { %v333_v29 = vadd.f32 %v332_v28, %v331_v27 }
 0x1d5   :  { %v334_v30 = vrot.slane %v333_v29, 2 }
 0x1d7   :  { %v335_v31 = vadd.f32 %v334_v30, %v333_v29 }
 0x1d9   :  { %v336_v32 = vrot.slane %v335_v31, 1 }
 0x1db   :  { %v337_v33 = vadd.f32 %v336_v32, %v335_v31 }
 0x1dd   :  { %375 = vpush %v337_v33 }
 0x20e   :  { %s376_s7 = spop %375 }
 0x20f   :  { %v339_v26 = vstv %s376_s7 }
 0x210   :  { %340 = vst [vmem:[#allocation7] sm:$0xff] %v339_v26 }
 0x211   :  { %447 = shalt.err (!%p444_p6)
}
 0x212   :  { %s448_s11 = scalar_lea.hbm %s538_s2, 128 }
 0x213   :  { %p449_p7 = scmp.ne.s32.totalorder %s538_s2, %s448_s11  ;;  %p452_p8 = scmp.lt.u32.totalorder %s448_s11, %s538_s2 }
 0x215   :  { %p454_p9 = pnand %p452_p8, %p449_p7 }
 0x217   :  { %457 = shalt.err (!%p454_p9)
}
 0x218   :  { %350 = dma.vmem_to_hbm [thread:$0]  %s348_s6, 128, %s538_s2, [#allocation4]  }
 0x219   :  { %462 = dma.done.wait [#allocation4], 128  }
 0x21a   :  { %463 = vsyncadd [#allocation4], 4294967168 }
 0x21b   :  { %354 = vsyncpa [#allocation3], 1 }
 0x21c   :  { %355 = vsyncpa [#allocation6], 1 }
 0x21d   :  { %356 = vsyncpa [#allocation4], 1 }

</bundles_post_ra>
